<compile_context>
chip_gen: v7x
topology: tpu7x:2x2x1
jax: 0.10.0
libtpu: 0.0.40
codegen_flags: <defaults>
</compile_context>

<pallas_src>
import functools

import jax
import jax.numpy as jnp
from jax.experimental import pallas as pl
from jax.experimental.pallas import tpu as pltpu

_LANES = 128
_SUBLANES = 8


def _round_up(x: int, m: int) -> int:
    return ((x + m - 1) // m) * m


def _discriminator_kernel(n_layers, *refs):
    """One batch tile per grid step; weights are VMEM-resident (constant index_map).

    ref layout (positional):
      x_ref                      (TB, n_input)   compute dtype (bf16 by default)
      [w_l, b_l] * n_layers      w (in, H_pad) compute dtype, b (1, H_pad) f32
      w_out_ref                  (1, H_pad) f32   -- output weight laid out as a row
      b_out_ref                  (1, 1)    f32    -- SMEM scalar
      fD_ref                     (TB, H_pad) f32
      p_ref                      (TB, 1)    f32
    """
    x_ref = refs[0]
    layer_refs = refs[1:1 + 2 * n_layers]
    w_out_ref = refs[1 + 2 * n_layers]
    b_out_ref = refs[2 + 2 * n_layers]
    fD_ref = refs[3 + 2 * n_layers]
    p_ref = refs[4 + 2 * n_layers]

    h = x_ref[...]
    for l in range(n_layers):  # static unroll -- n_layers is a Python int
        w = layer_refs[2 * l][...]
        b = layer_refs[2 * l + 1][...]
        # bf16 (or f32) operands into the MXU, f32 accumulation; bias add + ReLU in f32
        # (v5e has no bf16 VPU).
        h = jnp.dot(h, w, preferred_element_type=jnp.float32) + b
        h = jnp.maximum(h, 0.0)  # ReLU
        # Dropout: identity in eval mode.
        if l + 1 < n_layers:
            h = h.astype(w.dtype)  # feed the next MXU pass at compute dtype

    fD_ref[...] = h.astype(fD_ref.dtype)

    # Output head: an (H, 1) matmul would waste a full MXU pass for one output column;
    # do it as a VPU multiply + cross-lane (XLU) reduction instead.
    logit = jnp.sum(h * w_out_ref[...], axis=-1, keepdims=True) + b_out_ref[0, 0]
    # p kept (TB, 1): a single masked store per 8 rows is negligible next to the dense
    # f_D stores, while padding p to 128 lanes would double HBM writeback at n_hidden=128.
    p_ref[...] = jax.nn.sigmoid(logit).astype(p_ref.dtype)


def discriminator_forward(x, mlp_params, out_params, *, block_b=512,
                          compute_dtype=jnp.bfloat16):
    """x: (B, n_input) f32.
    mlp_params: list of (W_t, b) with W_t (in, n_hidden), b (1, n_hidden) (spectral-norm'd).
    out_params: (W_out_t, b_out) with W_out_t (n_hidden, 1), b_out (1, 1) (spectral-norm'd).
    Returns (f_D (B, n_hidden) f32, p_real (B, 1) f32)."""
    n_layers = len(mlp_params)
    B, n_input = x.shape
    n_hidden = mlp_params[-1][0].shape[1]

    itemsize = jnp.dtype(compute_dtype).itemsize

    # Lane-dense hidden width: zero-padding weights/biases keeps the math identical;
    # wrapper slices the padding back off.  (No-op at the module default n_hidden=128.)
    h_pad = _round_up(n_hidden, _LANES)

    # Batch tile: multiple of the sublane packing (16 for bf16, 8 for f32), capped by
    # block_b.  NOTE v7x has 64 MiB VMEM/TC -- keep
    #   2 * (TB*n_input*itemsize + TB*h_pad*4 + TB*4) + weight bytes
    # well under the scoped VMEM limit before raising block_b.
    sub = _SUBLANES * max(1, 4 // itemsize)
    tb = min(_round_up(block_b, sub), _round_up(B, sub))
    b_pad = _round_up(B, tb)
    grid = (b_pad // tb,)

    # ---- one-time parameter/input prep (pad + cast) in plain JAX ----
    x_p = jnp.zeros((b_pad, n_input), compute_dtype).at[:B].set(x.astype(compute_dtype))

    padded_layers = []
    for l, (w_t, b) in enumerate(mlp_params):
        in_dim = n_input if l == 0 else h_pad
        w_p = jnp.zeros((in_dim, h_pad), compute_dtype)
        w_p = w_p.at[:w_t.shape[0], :w_t.shape[1]].set(w_t.astype(compute_dtype))
        b_p = jnp.zeros((1, h_pad), jnp.float32).at[:, :b.shape[-1]].set(
            b.reshape(1, -1).astype(jnp.float32))
        padded_layers.append((w_p, b_p))

    w_out_t, b_out = out_params
    w_out_row = jnp.zeros((1, h_pad), jnp.float32).at[:, :n_hidden].set(
        w_out_t.reshape(-1).astype(jnp.float32)[None, :])
    b_out_s = jnp.asarray(b_out, jnp.float32).reshape(1, 1)

    flat_args = [x_p]
    for w_p, b_p in padded_layers:
        flat_args += [w_p, b_p]
    flat_args += [w_out_row, b_out_s]

    # ---- specs: batch-tiled activations, resident weights, SMEM scalar bias ----
    const0 = lambda i: (0, 0)
    in_specs = [pl.BlockSpec((tb, n_input), lambda i: (i, 0))]
    for w_p, b_p in padded_layers:
        in_specs += [pl.BlockSpec(w_p.shape, const0),
                     pl.BlockSpec(b_p.shape, const0)]
    in_specs += [pl.BlockSpec(w_out_row.shape, const0),
                 pl.BlockSpec(memory_space=pltpu.MemorySpace.SMEM)]

    out_specs = (pl.BlockSpec((tb, h_pad), lambda i: (i, 0)),
                 pl.BlockSpec((tb, 1), lambda i: (i, 0)))
    out_shape = (jax.ShapeDtypeStruct((b_pad, h_pad), jnp.float32),
                 jax.ShapeDtypeStruct((b_pad, 1), jnp.float32))

    # Advisory cost hint so XLA can overlap this small custom call with neighbors.
    flops = 2 * b_pad * (n_input * h_pad
                         + max(n_layers - 1, 0) * h_pad * h_pad
                         + h_pad)
    bytes_accessed = (x_p.size * itemsize
                      + sum(w.size * itemsize + bb.size * 4 for w, bb in padded_layers)
                      + w_out_row.size * 4 + 4
                      + b_pad * h_pad * 4 + b_pad * 4)
    cost = pl.CostEstimate(flops=int(flops), transcendentals=int(b_pad),
                           bytes_accessed=int(bytes_accessed))

    kernel = functools.partial(_discriminator_kernel, n_layers)
    f_d_pad, p_pad = pl.pallas_call(
        kernel,
        grid=grid,
        in_specs=in_specs,
        out_specs=out_specs,
        out_shape=out_shape,
        compiler_params=pltpu.CompilerParams(
            dimension_semantics=("parallel",)),  # batch tiles shard across TCs on v7x
        cost_estimate=cost,
    )(*flat_args)

    return f_d_pad[:B, :n_hidden], p_pad[:B]


# ----------------------------------------------------------------------------
# Parameter construction matching torch defaults (spectral_norm applied at eval).
# ----------------------------------------------------------------------------
def _spectral_normalize(w):
    """Effective weight under torch spectral_norm at eval: W / sigma_max(W)."""
    sigma = jnp.linalg.norm(w, ord=2)
    return w / sigma


def _init_linear(key, fan_in, fan_out):
    """PyTorch nn.Linear default init: U(-1/sqrt(fan_in), 1/sqrt(fan_in))."""
    kw, kb = jax.random.split(key)
    bound = 1.0 / jnp.sqrt(float(fan_in))
    w = jax.random.uniform(kw, (fan_out, fan_in), jnp.float32, -bound, bound)
    b = jax.random.uniform(kb, (fan_out,), jnp.float32, -bound, bound)
    return w, b


def build_discriminator_params(key, n_input, n_hidden, n_layers):
    keys = jax.random.split(key, n_layers + 1)
    mlp_params = []
    fan_in = n_input
    for l in range(n_layers):
        w, b = _init_linear(keys[l], fan_in, n_hidden)
        w = _spectral_normalize(w)
        mlp_params.append((w.T, b.reshape(1, n_hidden)))  # W_t is (in, out)
        fan_in = n_hidden
    w_out, b_out = _init_linear(keys[-1], n_hidden, 1)
    w_out = _spectral_normalize(w_out)
    out_params = (w_out.T, b_out.reshape(1, 1))
    return mlp_params, out_params


if __name__ == "__main__":
    # Module-consistent small shapes (defaults: n_hidden=128, n_layers=1).
    B, N_INPUT, N_HIDDEN, N_LAYERS = 256, 16, 128, 1

    key = jax.random.PRNGKey(0)
    k_params, k_x = jax.random.split(key)
    mlp_params, out_params = build_discriminator_params(
        k_params, n_input=N_INPUT, n_hidden=N_HIDDEN, n_layers=N_LAYERS)
    x = jax.random.normal(k_x, (B, N_INPUT), jnp.float32)

    # block_b=128 -> grid=(2,), exercising the batch pipeline.
    f_D, p_real = discriminator_forward(x, mlp_params, out_params, block_b=128)
    jax.block_until_ready((f_D, p_real))

    # Pure-JAX reference mirroring the kernel numerics (bf16 MXU operands, f32 accumulate).
    h_ref = x
    for w_t, b in mlp_params:
        acc = jnp.dot(h_ref.astype(jnp.bfloat16), w_t.astype(jnp.bfloat16),
                      preferred_element_type=jnp.float32)
        h_ref = jnp.maximum(acc + b, 0.0)
    logit_ref = jnp.sum(h_ref * out_params[0].reshape(1, -1), axis=-1,
                        keepdims=True) + out_params[1].reshape(1, 1)
    p_ref = jax.nn.sigmoid(logit_ref)

    assert f_D.shape == (B, N_HIDDEN) and p_real.shape == (B, 1)
    assert bool(jnp.allclose(f_D, h_ref, atol=1e-3, rtol=1e-3))
    assert bool(jnp.allclose(p_real, p_ref, atol=1e-3))

    print("KERNEL_OK")
</pallas_src>

<mosaic_0001>
module attributes {stable_mosaic.version = 11 : i64} {
  func.func @_discriminator_kernel(%arg0: i32, %arg1: memref<128x16xbf16, #tpu.memory_space<vmem>>, %arg2: memref<16x128xbf16, #tpu.memory_space<vmem>>, %arg3: memref<1x128xf32, #tpu.memory_space<vmem>>, %arg4: memref<1x128xf32, #tpu.memory_space<vmem>>, %arg5: memref<1x1xf32, #tpu.memory_space<smem>>, %arg6: memref<128x128xf32, #tpu.memory_space<vmem>>, %arg7: memref<128x1xf32, #tpu.memory_space<vmem>>) attributes {dimension_semantics = [#tpu.dimension_semantics<parallel>], iteration_bounds = array<i64: 2>, scalar_prefetch = 0 : i64, scratch_operands = 0 : i64, tpu.core_type = #tpu.core_type<tc>, window_params = [{transform_indices = @transform_0, window_bounds = array<i64: 128, 16>}, {pipeline_mode = #tpu.pipeline_mode<synchronous>, transform_indices = @transform_1, window_bounds = array<i64: 16, 128>}, {pipeline_mode = #tpu.pipeline_mode<synchronous>, transform_indices = @transform_2, window_bounds = array<i64: 1, 128>}, {pipeline_mode = #tpu.pipeline_mode<synchronous>, transform_indices = @transform_3, window_bounds = array<i64: 1, 128>}, {transform_indices = @transform_4, window_bounds = array<i64: 1, 1>}, {transform_indices = @transform_5, window_bounds = array<i64: 128, 128>}, {transform_indices = @transform_6, window_bounds = array<i64: 128, 1>}]} {
    %c0 = arith.constant 0 : index
    %c0_0 = arith.constant 0 : index
    %0 = vector.load %arg1[%c0, %c0_0] : memref<128x16xbf16, #tpu.memory_space<vmem>>, vector<128x16xbf16>
    %c0_1 = arith.constant 0 : index
    %c0_2 = arith.constant 0 : index
    %1 = vector.load %arg2[%c0_1, %c0_2] : memref<16x128xbf16, #tpu.memory_space<vmem>>, vector<16x128xbf16>
    %c0_3 = arith.constant 0 : index
    %c0_4 = arith.constant 0 : index
    %2 = vector.load %arg3[%c0_3, %c0_4] : memref<1x128xf32, #tpu.memory_space<vmem>>, vector<1x128xf32>
    %cst = arith.constant dense<0.000000e+00> : vector<128x128xf32>
    %3 = tpu.matmul %0, %1, %cst {dimension_numbers = #tpu.dot_dimension_numbers<[1], [0], [0], [1], [0, 0, 1, 1], [], []>} : vector<128x16xbf16>, vector<16x128xbf16>, vector<128x128xf32> -> vector<128x128xf32>
    %4 = vector.broadcast %2 : vector<1x128xf32> to vector<128x128xf32>
    %5 = arith.addf %3, %4 : vector<128x128xf32>
    %cst_5 = arith.constant 0.000000e+00 : f32
    %6 = vector.broadcast %cst_5 : f32 to vector<128x128xf32>
    %7 = arith.maximumf %5, %6 : vector<128x128xf32>
    %c0_6 = arith.constant 0 : index
    %c0_7 = arith.constant 0 : index
    %8 = vector.load %arg6[%c0_6, %c0_7] : memref<128x128xf32, #tpu.memory_space<vmem>>, vector<128x128xf32>
    tpu.vector_store %arg6[%c0_6, %c0_7], %7 {strides = array<i32>} : memref<128x128xf32, #tpu.memory_space<vmem>>, vector<128x128xf32>,
    %c0_8 = arith.constant 0 : index
    %c0_9 = arith.constant 0 : index
    %9 = vector.load %arg4[%c0_8, %c0_9] : memref<1x128xf32, #tpu.memory_space<vmem>>, vector<1x128xf32>
    %10 = vector.broadcast %9 : vector<1x128xf32> to vector<128x128xf32>
    %11 = arith.mulf %7, %10 : vector<128x128xf32>
    %cst_10 = arith.constant dense<0.000000e+00> : vector<128xf32>
    %12 = vector.multi_reduction <add>, %11, %cst_10 [1] : vector<128x128xf32> to vector<128xf32>
    %13 = vector.shape_cast %12 : vector<128xf32> to vector<128x1xf32>
    %c0_11 = arith.constant 0 : index
    %c0_12 = arith.constant 0 : index
    %14 = memref.load %arg5[%c0_11, %c0_12] : memref<1x1xf32, #tpu.memory_space<smem>>
    %15 = vector.broadcast %14 : f32 to vector<128x1xf32>
    %16 = arith.addf %13, %15 : vector<128x1xf32>
    %17 = arith.negf %16 : vector<128x1xf32>
    %18 = math.exp %17 : vector<128x1xf32>
    %cst_13 = arith.constant 1.000000e+00 : f32
    %19 = vector.broadcast %cst_13 : f32 to vector<128x1xf32>
    %20 = arith.addf %19, %18 : vector<128x1xf32>
    %21 = arith.divf %19, %20 : vector<128x1xf32>
    %c0_14 = arith.constant 0 : index
    %c0_15 = arith.constant 0 : index
    %22 = vector.load %arg7[%c0_14, %c0_15] : memref<128x1xf32, #tpu.memory_space<vmem>>, vector<128x1xf32>
    tpu.vector_store %arg7[%c0_14, %c0_15], %21 {strides = array<i32>} : memref<128x1xf32, #tpu.memory_space<vmem>>, vector<128x1xf32>,
    return
  }
  func.func @transform_0(%arg0: i32) -> (i32, i32) {
    %c0_i32 = arith.constant 0 : i32
    %c0_i32_0 = arith.constant 0 : i32
    return %arg0, %c0_i32 : i32, i32
  }
  func.func @transform_1(%arg0: i32) -> (i32, i32) {
    %c0_i32 = arith.constant 0 : i32
    %c0_i32_0 = arith.constant 0 : i32
    %c0_i32_1 = arith.constant 0 : i32
    return %c0_i32, %c0_i32_0 : i32, i32
  }
  func.func @transform_2(%arg0: i32) -> (i32, i32) {
    %c0_i32 = arith.constant 0 : i32
    %c0_i32_0 = arith.constant 0 : i32
    %c0_i32_1 = arith.constant 0 : i32
    return %c0_i32, %c0_i32_0 : i32, i32
  }
  func.func @transform_3(%arg0: i32) -> (i32, i32) {
    %c0_i32 = arith.constant 0 : i32
    %c0_i32_0 = arith.constant 0 : i32
    %c0_i32_1 = arith.constant 0 : i32
    return %c0_i32, %c0_i32_0 : i32, i32
  }
  func.func @transform_4(%arg0: i32) -> (i32, i32) {
    %c0_i32 = arith.constant 0 : i32
    %c0_i32_0 = arith.constant 0 : i32
    %c0_i32_1 = arith.constant 0 : i32
    return %c0_i32, %c0_i32_0 : i32, i32
  }
  func.func @transform_5(%arg0: i32) -> (i32, i32) {
    %c0_i32 = arith.constant 0 : i32
    %c0_i32_0 = arith.constant 0 : i32
    return %arg0, %c0_i32 : i32, i32
  }
  func.func @transform_6(%arg0: i32) -> (i32, i32) {
    %c0_i32 = arith.constant 0 : i32
    %c0_i32_0 = arith.constant 0 : i32
    return %arg0, %c0_i32 : i32, i32
  }
}

</mosaic_0001>

<bundles_post_ra>
// kernel: tpu_custom_call.1
= control target key start
LH: loop header
LB: loop body
LE: loop exit
PB: predicated region body
PF: predicated region fallthrough
CT: control target
= control target key end

     0   :  { %s1328_s0 = inlined_call_operand.vmem [shape: bf16[256,16], index: 0, kind: input, shape index: {}]   ;;  %s1329_s1 = inlined_call_operand.vmem [shape: bf16[16,128], index: 1, kind: input, shape index: {}]   ;;  %s1330_s2 = inlined_call_operand.vmem [shape: f32[1,128], index: 2, kind: input, shape index: {}]   ;;  %s1331_s3 = inlined_call_operand.vmem [shape: f32[1,128], index: 3, kind: input, shape index: {}]   ;;  %s1332_s4 = inlined_call_operand.<no memory space> [shape: f32[1,1], index: 4, kind: input, shape index: {}]   ;;  %s1333_s5 = inlined_call_operand.hbm [shape: f32[256,128], index: 5, kind: output, shape index: {0}]   ;;  %s1334_s6 = inlined_call_operand.vmem [shape: f32[256,1], index: 6, kind: output, shape index: {1}]  }
   0x1   :  { %12 = sst [smem:[#allocation2]] %s1332_s4 }
   0x2   :  { %13 = vsyncpa [#allocation4], 0 }
   0x3   :  { %15 = vsyncpa [#allocation4 + $0x1], 0  ;;  %s1088_s23 = smov 0   ;;  %s1090_s24 = smov 0  }
   0x4   :  { %s1092_s25 = smov 0   ;;  %s1094_s26 = smov 0  }
   0x5 LB: > { %s1109_s4 = sadd.s32 4294967295, %s1045_s26   ;;  %s790_s27 = sadd.s32 4294967294, %s1045_s26   ;;  %s1045_s26 = sphi %s1094_s26, %s1340_s26   ;;  %s1041_s25 = sphi %s1092_s25, %s1339_s25   ;;  %s1037_s24 = sphi %s1090_s24, %s1338_s24   ;;  %s1033_s23 = sphi %s1088_s23, %s1337_s23  }
   0x6   : > { %s1113_s28 = sadd.s32 1, %s1045_s26   ;;  %s138_s29 = sadd.s32 1, %s1041_s25 }
   0x7   : > { %s135_s30 = ssub.s32 %s1045_s26, %s1113_s28  ;;  %p148_p0 = scmp.ne.s32.totalorder %s1041_s25, %s1037_s24 }
   0x8   : > { %p136_p1 = scmp.eq.s32.totalorder %s135_s30, 0  ;;  %p149_p2 = scmp.eq.s32.totalorder %s1109_s4, 1 }
   0x9   : > { %p154_p3 = scmp.ne.s32.totalorder %s1037_s24, %s1033_s23  ;;  %p155_p4 = scmp.eq.s32.totalorder %s790_s27, 1 }
   0xa   : > { %s1124_s7 = scalar_select %p136_p1, %s1041_s25, %s138_s29  }
   0xb   : > { %p1126_p5 = por %p149_p2, %p148_p0  ;;  %p1130_p6 = por %p155_p4, %p154_p3 }
   0xc   : > { %p793_p7 = scmp.ge.s32.totalorder %s1045_s26, 1  ;;  %p220_p8 = scmp.lt.s32.totalorder %s1045_s26, 3 }
   0xe   : > { %p221_p9 = pnand %p793_p7, %p220_p8 }
   0xf   : > { %v910_v0 = vld [vmem:[%s1329_s1] sm:$0xff] (!%p221_p9)   ;;  %s795_s12 = sshll.u32 (!%p221_p9), %s1109_s4, 4  ;;  %vm340_vm0 = vcmask (!%p221_p9), 130048   ;;  %s245_s17 = sand.u32 (!%p221_p9), 1, %s1037_s24  }
  0x10   : > { %224 = sbr.rel (%p221_p9) target bundleno = 448 (0x1c0), region = 40  ;;  %p256_p10 = scmp.lt.s32.totalorder (!%p221_p9), %s795_s12, 31  ;;  %849 = vmatprep.subr.bf16.mxu0 (!%p221_p9), %v910_v0  ;;  %867 = vmatprep.subr.bf16.mxu1 (!%p221_p9), %v910_v0  ;;  %v1158_v9 = vld [vmem:[%s1330_s2] ss:$0 sm:$0xff] (!%p221_p9) }
  0x11   : > { %850 = vmatpush3.bf16.msra.mxu0 (!%p221_p9), %v910_v0  ;;  %868 = vmatpush3.bf16.msra.mxu1 (!%p221_p9), %v910_v0  ;;  %s794_s20 = sshll.u32 (!%p221_p9), %s245_s17, 7  ;;  %v1168_v18 = vld [vmem:[%s1331_s3] ss:$0 sm:$0xff] (!%p221_p9)  ;;  %s839_s29 = sshll.u32 (!%p221_p9), %s1109_s4, 11 }
  0x12   : > { %s1176_s27 = scalar_lea.vmem (!%p221_p9), [#allocation3], %s794_s20  ;;  %s1231_s14 = scalar_lea.sflag (!%p221_p9), [#allocation4], %s245_s17 }
  0x13   : > { %s699_s30 = sshll.u32 (!%p221_p9), %s1176_s27, 4  ;;  %s1047_s4 = smov (!%p221_p9), [#allocation3]   ;;  %s1227_s30 = int_to_ptr.vmem [resolvable:$true] %s699_s30 }
  0x14   : > { %s983_s15 = scalar_lea.vmem (!%p221_p9), %s1227_s30, 2048 }
  0x15   : > { %p984_p11 = scmp.ne.s32.totalorder (!%p221_p9), %s1227_s30, %s983_s15 }
  0x17   : > { %s1342_s12 = smov (!%p256_p10, %s795_s12), 31  ;;  %p985_p12 = pnand %p984_p11, %p1126_p5 }
  0x18   : > { %s796_s13 = sshll.u32 %s1342_s12, 2 }
  0x19   : > { %s259_s16 = scalar_lea.vmem %s1328_s0, %s796_s13  ;;  %s1225_s13 = scalar_lea.hbm %s1333_s5, %s839_s29 }
  0x1a   : > { %v911_v1 = vld [vmem:[%s259_s16] sm:$0xff]   ;;  %v913_v3 = vld [vmem:[%s259_s16 + $0x8] sm:$0xff]   ;;  %v915_v5 = vld [vmem:[%s259_s16 + $0x10] sm:$0xff]   ;;  %p986_p13 = pneg %p985_p12 }
  0x1b   : > { %v912_v2 = vld [vmem:[%s259_s16 + $0x20] sm:$0xff]   ;;  %851 = vmatprep.mubr.msk.bf16.mxu0 %vm340_vm0, %v911_v1  ;;  %v914_v4 = vld [vmem:[%s259_s16 + $0x28] sm:$0xff]   ;;  %v917_v6 = vld [vmem:[%s259_s16 + $0x30] sm:$0xff]  }
  0x1c   : > { %859 = vmatprep.mubr.msk.bf16.mxu1 %vm340_vm0, %v912_v2  ;;  %852 = vmatmul.mubr.msk.bf16.vlgmr.msra.gmra.mrb[0].mxu0 %vm340_vm0, %v913_v3  ;;  %v916_v7 = vld [vmem:[%s259_s16 + $0x18] sm:$0xff]  }
  0x1d   : > { %860 = vmatmul.mubr.msk.bf16.vlgmr.msra.gmra.mrb[0].mxu1 %vm340_vm0, %v914_v4  ;;  %855 = vmatprep.mubr.msk.bf16.mxu0 %vm340_vm0, %v915_v5  ;;  %v918_v8 = vld [vmem:[%s259_s16 + $0x38] sm:$0xff]   ;;  %s987_s16 = sshll.u32 %s1047_s4, 4  ;;  %s988_s16 = int_to_ptr.vmem [resolvable:$false] %s987_s16 }
  0x1e   : > { %863 = vmatprep.mubr.msk.bf16.mxu1 %vm340_vm0, %v917_v6  ;;  %s989_s18 = scalar_lea.vmem %s988_s16, 4096  ;;  %p990_p0 = scmp.lt.s32.totalorder %s1227_s30, %s988_s16 }
  0x1f   : > { %p991_p1 = scmp.lt.s32.totalorder %s989_s18, %s983_s15 }
  0x21   : > { %p992_p2 = por %p991_p1, %p990_p0 }
  0x23   : > { %p993_p3 = pnand %p992_p2, %p986_p13 }
  0x24   : > { %856 = vmatmul.mubr.msk.bf16.gmra.mrb[4].mxu0 %vm340_vm0, %v916_v7 }
  0x25   : > { %864 = vmatmul.mubr.msk.bf16.gmra.mrb[4].mxu1 %vm340_vm0, %v918_v8 }
  0xef   : > { %v853_v10 = vpop.f32.mrb[0].mxu0 }
  0xf0   : > { %v408_v11 = vadd.f32 %v853_v10, %v1158_v9  ;;  %v861_v12 = vpop.f32.mrb[0].mxu1  ;;  %v399_v13 = vpop.f32.mrb[1].mxu0 }
  0xf1   : > { %v440_v14 = vadd.f32 %v861_v12, %v1158_v9  ;;  %v400_v15 = vadd.f32 %v1158_v9, %v399_v13  ;;  %v431_v16 = vpop.f32.mrb[1].mxu1  ;;  %v854_v17 = vpop.f32.mrb[2].mxu0 }
  0xf2   : > { %v464_v19 = vmax.f32 %v408_v11, 0.0  ;;  %v432_v20 = vadd.f32 %v1158_v9, %v431_v16  ;;  %v411_v21 = vadd.f32 %v854_v17, %v1158_v9  ;;  %v862_v22 = vpop.f32.mrb[2].mxu1  ;;  %v402_v23 = vpop.f32.mrb[3].mxu0 }
  0xf3   : > { %v472_v24 = vmax.f32 %v440_v14, 0.0  ;;  %v462_v25 = vmax.f32 %v400_v15, 0.0  ;;  %v443_v26 = vadd.f32 %v862_v22, %v1158_v9  ;;  %v1174_v27 = vadd.f32 %v1158_v9, %v402_v23  ;;  %v434_v28 = vpop.f32.mrb[3].mxu1 }
  0xf4   : > { %480 = vst [vmem:[%s1176_s27 + $0x10] sm:$0xff] %v464_v19  ;;  %v470_v29 = vmax.f32 %v432_v20, 0.0  ;;  %v465_v30 = vmax.f32 %v411_v21, 0.0  ;;  %v435_v31 = vadd.f32 %v1158_v9, %v434_v28  ;;  %v503_v32 = vmul.f32 %v1168_v18, %v464_v19 }
  0xf5   : > { %488 = vst [vmem:[%s1176_s27 + $0x50] sm:$0xff] %v472_v24  ;;  %478 = vst [vmem:[%s1176_s27] sm:$0xff] %v462_v25  ;;  %v473_v33 = vmax.f32 %v443_v26, 0.0  ;;  %v463_v34 = vmax.f32 %v1174_v27, 0.0  ;;  %v511_v35 = vmul.f32 %v1168_v18, %v472_v24  ;;  %v501_v42 = vmul.f32 %v1168_v18, %v462_v25 }
  0xf6   : > { %486 = vst [vmem:[%s1176_s27 + $0x40] sm:$0xff] %v470_v29  ;;  %481 = vst [vmem:[%s1176_s27 + $0x18] sm:$0xff] %v465_v30  ;;  %v471_v36 = vmax.f32 %v435_v31, 0.0  ;;  %521 = vadd.xlane.f32.xlu1 %v503_v32  ;;  %v504_v38 = vmul.f32 %v1168_v18, %v465_v30  ;;  %v509_v62 = vmul.f32 %v1168_v18, %v470_v29 }
  0xf7   : > { %489 = vst [vmem:[%s1176_s27 + $0x58] sm:$0xff] %v473_v33  ;;  %479 = vst [vmem:[%s1176_s27 + $0x8] sm:$0xff] %v463_v34  ;;  %537 = vadd.xlane.f32.xlu0 %v511_v35  ;;  %v857_v37 = vpop.f32.mrb[4].mxu0  ;;  %v512_v58 = vmul.f32 %v1168_v18, %v473_v33  ;;  %v502_v2 = vmul.f32 %v1168_v18, %v463_v34 }
  0xf8   : > { %487 = vst [vmem:[%s1176_s27 + $0x48] sm:$0xff] %v471_v36  ;;  %v424_v39 = vadd.f32 %v857_v37, %v1158_v9  ;;  %v415_v40 = vpop.f32.mrb[5].mxu0  ;;  %v865_v41 = vpop.f32.mrb[4].mxu1  ;;  %v510_v1 = vmul.f32 %v1168_v18, %v471_v36 }
  0xf9   : > { %v416_v43 = vadd.f32 %v1158_v9, %v415_v40  ;;  %v858_v44 = vpop.f32.mrb[6].mxu0  ;;  %v456_v45 = vadd.f32 %v865_v41, %v1158_v9  ;;  %v447_v46 = vpop.f32.mrb[5].mxu1 }
  0xfa   : > { %523 = vadd.xlane.f32.xlu1 %v504_v38  ;;  %v468_v47 = vmax.f32 %v424_v39, 0.0  ;;  %v427_v48 = vadd.f32 %v858_v44, %v1158_v9  ;;  %v418_v49 = vpop.f32.mrb[7].mxu0  ;;  %v448_v50 = vadd.f32 %v1158_v9, %v447_v46  ;;  %v866_v51 = vpop.f32.mrb[6].mxu1 }
  0xfb   : > { %517 = vadd.xlane.f32.xlu0 %v501_v42  ;;  %v466_v52 = vmax.f32 %v416_v43, 0.0  ;;  %v419_v53 = vadd.f32 %v1158_v9, %v418_v49  ;;  %v476_v54 = vmax.f32 %v456_v45, 0.0  ;;  %v459_v55 = vadd.f32 %v866_v51, %v1158_v9  ;;  %v450_v56 = vpop.f32.mrb[7].mxu1 }
  0xfc   : > { %484 = vst [vmem:[%s1176_s27 + $0x30] sm:$0xff] %v468_v47  ;;  %v469_v57 = vmax.f32 %v427_v48, 0.0  ;;  %v474_v59 = vmax.f32 %v448_v50, 0.0  ;;  %v451_v60 = vadd.f32 %v1158_v9, %v450_v56  ;;  %v507_v4 = vmul.f32 %v1168_v18, %v468_v47 }
  0xfd   : > { %482 = vst [vmem:[%s1176_s27 + $0x20] sm:$0xff] %v466_v52  ;;  %v467_v61 = vmax.f32 %v419_v53, 0.0  ;;  %492 = vst [vmem:[%s1176_s27 + $0x70] sm:$0xff] %v476_v54  ;;  %v477_v63 = vmax.f32 %v459_v55, 0.0  ;;  %v505_v6 = vmul.f32 %v1168_v18, %v466_v52  ;;  %v515_v10 = vmul.f32 %v1168_v18, %v476_v54 }
  0xfe   : > { %485 = vst [vmem:[%s1176_s27 + $0x38] sm:$0xff] %v469_v57  ;;  %539 = vadd.xlane.f32.xlu1 %v512_v58  ;;  %490 = vst [vmem:[%s1176_s27 + $0x60] sm:$0xff] %v474_v59  ;;  %v475_v0 = vmax.f32 %v451_v60, 0.0  ;;  %v508_v3 = vmul.f32 %v1168_v18, %v469_v57  ;;  %v513_v8 = vmul.f32 %v1168_v18, %v474_v59 }
  0xff   : > { %483 = vst [vmem:[%s1176_s27 + $0x28] sm:$0xff] %v467_v61  ;;  %533 = vadd.xlane.f32.xlu0 %v509_v62  ;;  %493 = vst [vmem:[%s1176_s27 + $0x78] sm:$0xff] %v477_v63  ;;  %v506_v5 = vmul.f32 %v1168_v18, %v467_v61  ;;  %v516_v9 = vmul.f32 %v1168_v18, %v477_v63 }
 0x100   : > { %491 = vst [vmem:[%s1176_s27 + $0x68] sm:$0xff] %v475_v0  ;;  %v514_v7 = vmul.f32 %v1168_v18, %v475_v0 }
 0x102   : > { %535 = vadd.xlane.f32.xlu1 %v510_v1 }
 0x103   : > { %519 = vadd.xlane.f32.xlu0 %v502_v2 }
 0x106   : > { %531 = vadd.xlane.f32.xlu1 %v508_v3 }
 0x107   : > { %529 = vadd.xlane.f32.xlu0 %v507_v4 }
 0x10a   : > { %527 = vadd.xlane.f32.xlu1 %v506_v5 }
 0x10b   : > { %525 = vadd.xlane.f32.xlu0 %v505_v6 }
 0x10e   : > { %543 = vadd.xlane.f32.xlu1 %v514_v7 }
 0x10f   : > { %541 = vadd.xlane.f32.xlu0 %v513_v8 }
 0x112   : > { %547 = vadd.xlane.f32.xlu1 %v516_v9 }
 0x113   : > { %545 = vadd.xlane.f32.xlu0 %v515_v10 }
 0x114   : > { %996 = shalt.err (!%p993_p3)
}
 0x115   : > { %s997_s17 = scalar_lea.hbm %s1225_s13, 2048  ;;  %s1001_s21 = scalar_lea.hbm %s1333_s5, 4096 }
 0x116   : > { %p998_p4 = scmp.ne.s32.totalorder %s1225_s13, %s997_s17  ;;  %p1002_p9 = scmp.lt.u32.totalorder %s1225_s13, %s1333_s5 }
 0x117   : > { %p1003_p10 = scmp.lt.u32.totalorder %s1001_s21, %s997_s17  ;;  %p1005_p12 = scmp.lt.u32.totalorder %s997_s17, %s1225_s13 }
 0x118   : > { %p999_p7 = pnand %p998_p4, %p1126_p5 }
 0x119   : > { %p1004_p11 = por %p1003_p10, %p1002_p9 }
 0x11a   : > { %p1000_p8 = pneg %p999_p7 }
 0x11b   : > { %p1006_p13 = por %p1005_p12, %p1004_p11 }
 0x11d   : > { %p1007_p0 = pnand %p1006_p13, %p1000_p8 }
 0x11f   : > { %1010 = shalt.err (!%p1007_p0)
}
 0x120   : > { %s1048_s29 = smov 128   ;;  %s1049_s10 = smov 8   ;;  %vm663_vm1 = vcmask 7168  }
 0x121   : > { %869 = dma.vmem_to_hbm [thread:$0]  (%p1126_p5), %s1227_s30, 2048, %s1225_s13, %s1231_s14, %s1048_s29, %s1048_s29, %s1049_s10  }
 0x122   : > { %s549_s11 = sld [smem:[#allocation2]]  ;;  %s798_s8 = sshll.u32 %s1342_s12, 3 }
 0x123   : > { %s1274_s14 = scalar_lea.vmem %s1334_s6, %s798_s8 }
 0x128   : > { %v1255_v11 = vstv %s549_s11 }
 0x183   : > { %v522_v12 = vpop.xlane.xlu1 %521 }
 0x184   : > { %v538_v13 = vpop.xlane.xlu0 %537  ;;  %v553_v14 = vadd.f32 %v1255_v11, %v522_v12 }
 0x185   : > { %v561_v15 = vadd.f32 %v1255_v11, %v538_v13 }
 0x186   : > { %v820_v16 = vmul.f32 -1.442695, %v553_v14 }
 0x187   : > { %v828_v17 = vmul.f32 -1.442695, %v561_v15  ;;  %v524_v18 = vpop.xlane.xlu1 %523 }
 0x188   : > { %919 = vpow2.f32 %v820_v16  ;;  %v554_v19 = vadd.f32 %v1255_v11, %v524_v18  ;;  %v518_v20 = vpop.xlane.xlu0 %517 }
 0x189   : > { %921 = vpow2.f32 %v828_v17  ;;  %v551_v21 = vadd.f32 %v1255_v11, %v518_v20 }
 0x18a   : > { %v821_v22 = vmul.f32 -1.442695, %v554_v19 }
 0x18b   : > { %v818_v23 = vmul.f32 -1.442695, %v551_v21  ;;  %v540_v24 = vpop.xlane.xlu1 %539 }
 0x18c   : > { %923 = vpow2.f32 %v821_v22  ;;  %v562_v25 = vadd.f32 %v1255_v11, %v540_v24  ;;  %v534_v26 = vpop.xlane.xlu0 %533 }
 0x18d   : > { %925 = vpow2.f32 %v818_v23  ;;  %v559_v27 = vadd.f32 %v1255_v11, %v534_v26 }
 0x18e   : > { %v829_v28 = vmul.f32 -1.442695, %v562_v25 }
 0x18f   : > { %v826_v29 = vmul.f32 -1.442695, %v559_v27  ;;  %v536_v30 = vpop.xlane.xlu1 %535 }
 0x190   : > { %927 = vpow2.f32 %v829_v28  ;;  %v560_v31 = vadd.f32 %v1255_v11, %v536_v30  ;;  %v520_v32 = vpop.xlane.xlu0 %519 }
 0x191   : > { %929 = vpow2.f32 %v826_v29  ;;  %v552_v33 = vadd.f32 %v1255_v11, %v520_v32 }
 0x192   : > { %v920_v34 = vpop.eup %919  ;;  %v827_v35 = vmul.f32 -1.442695, %v560_v31 }
 0x193   : > { %v922_v36 = vpop.eup %921  ;;  %v617_v37 = vadd.f32 1.0, %v920_v34  ;;  %v819_v38 = vmul.f32 -1.442695, %v552_v33  ;;  %v532_v39 = vpop.xlane.xlu1 %531 }
 0x194   : > { %v625_v40 = vadd.f32 1.0, %v922_v36  ;;  %931 = vpow2.f32 %v827_v35  ;;  %v558_v41 = vadd.f32 %v1255_v11, %v532_v39  ;;  %v530_v42 = vpop.xlane.xlu0 %529 }
 0x195   : > { %933 = vrcp.f32 %v617_v37  ;;  %v557_v43 = vadd.f32 %v1255_v11, %v530_v42 }
 0x196   : > { %v924_v44 = vpop.eup %923  ;;  %935 = vrcp.f32 %v625_v40  ;;  %v825_v45 = vmul.f32 -1.442695, %v558_v41 }
 0x197   : > { %v926_v46 = vpop.eup %925  ;;  %v618_v47 = vadd.f32 1.0, %v924_v44  ;;  %937 = vpow2.f32 %v819_v38  ;;  %v824_v48 = vmul.f32 -1.442695, %v557_v43  ;;  %v528_v49 = vpop.xlane.xlu1 %527 }
 0x198   : > { %v615_v50 = vadd.f32 1.0, %v926_v46  ;;  %939 = vpow2.f32 %v825_v45  ;;  %v556_v51 = vadd.f32 %v1255_v11, %v528_v49  ;;  %v526_v52 = vpop.xlane.xlu0 %525 }
 0x199   : > { %941 = vrcp.f32 %v618_v47  ;;  %v555_v53 = vadd.f32 %v1255_v11, %v526_v52 }
 0x19a   : > { %v928_v54 = vpop.eup %927  ;;  %943 = vrcp.f32 %v615_v50  ;;  %v823_v55 = vmul.f32 -1.442695, %v556_v51 }
 0x19b   : > { %v930_v56 = vpop.eup %929  ;;  %v626_v57 = vadd.f32 1.0, %v928_v54  ;;  %945 = vpow2.f32 %v824_v48  ;;  %v822_v58 = vmul.f32 -1.442695, %v555_v53  ;;  %v544_v59 = vpop.xlane.xlu1 %543 }
 0x19c   : > { %v623_v60 = vadd.f32 1.0, %v930_v56  ;;  %947 = vpow2.f32 %v823_v55  ;;  %v564_v61 = vadd.f32 %v1255_v11, %v544_v59  ;;  %v542_v62 = vpop.xlane.xlu0 %541 }
 0x19d   : > { %949 = vrcp.f32 %v626_v57  ;;  %v563_v63 = vadd.f32 %v1255_v11, %v542_v62 }
 0x19e   : > { %v932_v0 = vpop.eup %931  ;;  %951 = vrcp.f32 %v623_v60  ;;  %v831_v1 = vmul.f32 -1.442695, %v564_v61 }
 0x19f   : > { %v934_v2 = vpop.eup %933  ;;  %v624_v3 = vadd.f32 1.0, %v932_v0  ;;  %953 = vpow2.f32 %v822_v58  ;;  %v830_v4 = vmul.f32 -1.442695, %v563_v63  ;;  %v548_v5 = vpop.xlane.xlu1 %547 }
 0x1a0   : > { %v936_v6 = vpop.eup %935  ;;  %666 = vst.msk [vmem:[%s1274_s14 + $0x10] sm:$0xff] %vm663_vm1, %v934_v2  ;;  %955 = vpow2.f32 %v831_v1  ;;  %v566_v7 = vadd.f32 %v1255_v11, %v548_v5  ;;  %v546_v8 = vpop.xlane.xlu0 %545 }
 0x1a1   : > { %v938_v9 = vpop.eup %937  ;;  %674 = vst.msk [vmem:[%s1274_s14 + $0x50] sm:$0xff] %vm663_vm1, %v936_v6  ;;  %957 = vrcp.f32 %v624_v3  ;;  %v565_v10 = vadd.f32 %v1255_v11, %v546_v8 }
 0x1a2   : > { %v940_v12 = vpop.eup %939  ;;  %v616_v13 = vadd.f32 1.0, %v938_v9  ;;  %959 = vpow2.f32 %v830_v4  ;;  %v833_v14 = vmul.f32 -1.442695, %v566_v7 }
 0x1a3   : > { %v942_v15 = vpop.eup %941  ;;  %v622_v16 = vadd.f32 1.0, %v940_v12  ;;  %v832_v17 = vmul.f32 -1.442695, %v565_v10 }
 0x1a4   : > { %v944_v18 = vpop.eup %943  ;;  %667 = vst.msk [vmem:[%s1274_s14 + $0x18] sm:$0xff] %vm663_vm1, %v942_v15  ;;  %961 = vrcp.f32 %v616_v13 }
 0x1a5   : > { %v946_v19 = vpop.eup %945  ;;  %664 = vst.msk [vmem:[%s1274_s14] sm:$0xff] %vm663_vm1, %v944_v18  ;;  %963 = vrcp.f32 %v622_v16 }
 0x1a6   : > { %v948_v20 = vpop.eup %947  ;;  %v621_v21 = vadd.f32 1.0, %v946_v19  ;;  %965 = vpow2.f32 %v833_v14 }
 0x1a7   : > { %v950_v11 = vpop.eup %949  ;;  %v620_v22 = vadd.f32 1.0, %v948_v20  ;;  %967 = vpow2.f32 %v832_v17 }
 0x1a8   : > { %v952_v23 = vpop.eup %951  ;;  %675 = vst.msk [vmem:[%s1274_s14 + $0x58] sm:$0xff] %vm663_vm1, %v950_v11  ;;  %969 = vrcp.f32 %v621_v21 }
 0x1a9   : > { %v954_v24 = vpop.eup %953  ;;  %672 = vst.msk [vmem:[%s1274_s14 + $0x40] sm:$0xff] %vm663_vm1, %v952_v23  ;;  %971 = vrcp.f32 %v620_v22 }
 0x1aa   : > { %v956_v25 = vpop.eup %955  ;;  %v619_v26 = vadd.f32 1.0, %v954_v24 }
 0x1ab   : > { %v958_v27 = vpop.eup %957  ;;  %v628_v28 = vadd.f32 1.0, %v956_v25 }
 0x1ac   : > { %v960_v29 = vpop.eup %959  ;;  %673 = vst.msk [vmem:[%s1274_s14 + $0x48] sm:$0xff] %vm663_vm1, %v958_v27  ;;  %973 = vrcp.f32 %v619_v26 }
 0x1ad   : > { %975 = vrcp.f32 %v628_v28  ;;  %v627_v30 = vadd.f32 1.0, %v960_v29 }
 0x1ae   : > { %v962_v31 = vpop.eup %961 }
 0x1af   : > { %v964_v32 = vpop.eup %963  ;;  %665 = vst.msk [vmem:[%s1274_s14 + $0x8] sm:$0xff] %vm663_vm1, %v962_v31  ;;  %977 = vrcp.f32 %v627_v30 }
 0x1b0   : > { %v966_v33 = vpop.eup %965  ;;  %671 = vst.msk [vmem:[%s1274_s14 + $0x38] sm:$0xff] %vm663_vm1, %v964_v32 }
 0x1b1   : > { %v968_v34 = vpop.eup %967  ;;  %v630_v35 = vadd.f32 1.0, %v966_v33 }
 0x1b2   : > { %v970_v36 = vpop.eup %969  ;;  %v629_v37 = vadd.f32 1.0, %v968_v34 }
 0x1b3   : > { %v972_v38 = vpop.eup %971  ;;  %670 = vst.msk [vmem:[%s1274_s14 + $0x30] sm:$0xff] %vm663_vm1, %v970_v36  ;;  %979 = vrcp.f32 %v630_v35 }
 0x1b4   : > { %669 = vst.msk [vmem:[%s1274_s14 + $0x28] sm:$0xff] %vm663_vm1, %v972_v38  ;;  %981 = vrcp.f32 %v629_v37 }
 0x1b6   : > { %v974_v39 = vpop.eup %973 }
 0x1b7   : > { %v976_v40 = vpop.eup %975  ;;  %668 = vst.msk [vmem:[%s1274_s14 + $0x20] sm:$0xff] %vm663_vm1, %v974_v39 }
 0x1b8   : > { %677 = vst.msk [vmem:[%s1274_s14 + $0x68] sm:$0xff] %vm663_vm1, %v976_v40 }
 0x1b9   : > { %v978_v41 = vpop.eup %977 }
 0x1ba   : > { %676 = vst.msk [vmem:[%s1274_s14 + $0x60] sm:$0xff] %vm663_vm1, %v978_v41 }
 0x1bd   : > { %v980_v42 = vpop.eup %979 }
 0x1be   : > { %v982_v43 = vpop.eup %981  ;;  %679 = vst.msk [vmem:[%s1274_s14 + $0x78] sm:$0xff] %vm663_vm1, %v980_v42 }
 0x1bf   : > { %678 = vst.msk [vmem:[%s1274_s14 + $0x70] sm:$0xff] %vm663_vm1, %v982_v43 }
 0x1c0 PF: > { %p875_p5 = scmp.ge.s32.totalorder %s1045_s26, 2  ;;  %s718_s12 = sand.u32 1, %s1033_s23  }
 0x1c1   : > { %s719_s15 = scalar_lea.sflag [#allocation4], %s718_s12 }
 0x1c2   : > { %p872_p1 = pnand %p875_p5, %p1130_p6 }
 0x1c4   : > { %1028 = dma.done.wait (!%p872_p1), %s719_s15, 2048  }
 0x1c5   : > { %1030 = vsyncadd (!%p872_p1), %s719_s15, 4294965248  ;;  %p18_p2 = scmp.ge.s32.totalorder %s1113_s28, 4   ;;  %s1337_s23 = smov %s1037_s24 }
 0x1c6   : > { %s1338_s24 = smov %s1041_s25  ;;  %s1339_s25 = smov %s1124_s7 }
 0x1c7   : > { %s1340_s26 = smov %s1113_s28  ;;  %20 = sbr.rel (!%p18_p2) target bundleno = 5 (0x5), region = 87 }
 0x1ce   :  { %732 = vsyncpa [#allocation4], 1 }
 0x1cf   :  { %734 = vsyncpa [#allocation4 + $0x1], 1 }

</bundles_post_ra>
